<compile_context>
chip_gen: v5e
topology: v5e:2x2
jax: 0.10.0
libtpu: 0.0.40
codegen_flags: <defaults>
</compile_context>

<pallas_src>
import math

import jax
import jax.numpy as jnp
from jax.experimental import pallas as pl
from jax.experimental.pallas import tpu as pltpu


def _round_up(x, m):
    return ((x + m - 1) // m) * m


def _device_kind():
    try:
        return jax.devices()[0].device_kind.lower()
    except Exception:
        return ""


def _tpu_vmem_bytes():
    try:
        return int(pltpu.get_tpu_info().vmem_capacity_bytes)
    except Exception:
        return 64 * 1024 * 1024  # conservative (v7x per-TensorCore)


def _pick_tile(dim, align, candidates):
    """Pick the candidate tile minimizing round-up padding (ties -> larger tile).
    A dim that already fits in the smallest candidate uses its own aligned extent."""
    dim_al = _round_up(dim, align)
    cands = sorted(c for c in candidates if c % align == 0)
    if dim_al <= cands[0]:
        return dim_al
    best_tile, best_pad = None, None
    for c in cands:
        pad = _round_up(dim_al, c)
        if best_pad is None or pad < best_pad or (pad == best_pad and c > best_tile):
            best_tile, best_pad = c, pad
    return best_tile


def _vmem_footprint(tm, tk, tn, op_bytes, w_buf):
    """Double-buffered VMEM working set of one grid step (bytes)."""
    return (2 * (2 * tm * tk) * op_bytes      # stacked [2,tm,tk] activations, 2 buffers
            + w_buf * tk * tn * op_bytes      # W^T tile, w_buf-deep pipelining
            + 2 * tn * 4                      # bias row (f32)
            + 2 * 2 * tm * tn * 4)            # two f32 output accumulators, 2 buffers


def _linear_transform_kernel(x_ref, wt_ref, b_ref, loc_ref, scale_ref):
    """loc = x[0] @ W^T + b ; scale = x[1] @ |W^T|.

    Grid = (M tiles, N tiles, K tiles), K last.  The output blocks double as
    f32 accumulators (block index constant over K => resident in VMEM); loc is
    initialized with the broadcast bias at k==0, scale with zeros.  |W| is
    formed in-register from the loaded W^T tile, so only one weight operand is
    streamed from HBM.
    """
    k = pl.program_id(2)

    @pl.when(k == 0)
    def _init():
        loc_ref[...] = jnp.broadcast_to(b_ref[...], loc_ref.shape)
        scale_ref[...] = jnp.zeros_like(scale_ref)

    w = wt_ref[...]
    if w.dtype == jnp.float32:
        # |w| = clear sign bit: a plain integer AND, cheap on every generation
        # (v5e has no bf16/f32 VALU fast path to rely on).
        aw = pltpu.bitcast(
            pltpu.bitcast(w, jnp.uint32) & jnp.uint32(0x7FFFFFFF), jnp.float32)
    else:
        aw = jnp.abs(w)   # bf16 path only taken on v6e/v7x (bf16 VALU)

    loc_ref[...] += jnp.dot(x_ref[0], w, preferred_element_type=jnp.float32)
    scale_ref[...] += jnp.dot(x_ref[1], aw, preferred_element_type=jnp.float32)


def linear_transformation_layer(location_param, scale_param, weight, bias, *,
                                use_bf16=None):
    """Pallas TPU implementation of LinearTransformationLayer.forward.

    Args:
      location_param: [batch, latent_dim]
      scale_param:    [batch, latent_dim]
      weight:         [n_classes, latent_dim]  (nn.Linear layout)
      bias:           [n_classes]
      use_bf16:       None = auto (bf16 MXU operands on v6e/v7x for non-tiny
                      shapes), True/False to force.  Accumulation is always f32.
    Returns:
      (loc [batch, n_classes], scale [batch, n_classes])
    """
    batch, latent_dim = location_param.shape
    n_classes = weight.shape[0]
    out_dtype = location_param.dtype

    kind = _device_kind()
    vmem_cap = _tpu_vmem_bytes()
    is_v7 = ("v7" in kind) or ("7x" in kind)

    if use_bf16 is None:
        newer_gen = any(t in kind for t in ("v6", "v7", "7x"))
        big_shape = batch * latent_dim * n_classes >= (1 << 24)  # ~16M MACs
        use_bf16 = bool(newer_gen and big_shape)

    operand_dtype = (jnp.bfloat16
                     if (use_bf16 or location_param.dtype == jnp.bfloat16)
                     else jnp.float32)
    op_bytes = jnp.dtype(operand_dtype).itemsize

    # --- tile selection: minimize padding waste over a small candidate set ---
    big_tiles = (op_bytes == 2) and vmem_cap >= (100 << 20)   # e.g. v6e + bf16
    nk_cands = (128, 256, 512, 1024) if big_tiles else (128, 256, 512)
    m_cands = (128, 256, 512)

    tm = _pick_tile(batch, 8, m_cands)
    tk = _pick_tile(latent_dim, 128, nk_cands)
    tn = _pick_tile(n_classes, 128, nk_cands)

    # --- fit the double-buffered working set within this chip's VMEM budget ---
    tile_budget = int(vmem_cap * 0.6)   # ~38 MiB on v7x (64 MiB), ~76 MiB on v5e/v6e
    while _vmem_footprint(tm, tk, tn, op_bytes, 2) > tile_budget:
        if tk >= tn and tk > 128:
            tk //= 2
        elif tn > 128:
            tn //= 2
        elif tm > 8:
            tm = max(8, _round_up(tm // 2, 8))
        else:
            break

    m_pad = _round_up(batch, tm)
    k_pad = _round_up(latent_dim, tk)
    n_pad = _round_up(n_classes, tn)
    m_grid = m_pad // tm
    n_grid = n_pad // tn
    k_grid = k_pad // tk

    # v7x has 2 TensorCores: make sure a "parallel" grid axis has >1 block so
    # megacore sharding has something to split.
    if is_v7 and m_grid == 1 and n_grid == 1:
        if n_pad >= 512 and (n_pad // 2) % 128 == 0:
            tn = n_pad // 2
            n_grid = 2
        elif tm >= 16 and (tm // 2) % 8 == 0:
            tm //= 2
            m_grid = m_pad // tm

    # Deeper buffering of the weight stream when weight DMA is the bottleneck
    # (small batch -> one M tile) and there are enough K/N steps to pipeline.
    w_buf = 2
    if (m_grid == 1 and n_grid * k_grid >= 3
            and _vmem_footprint(tm, tk, tn, op_bytes, 3) <= tile_budget):
        w_buf = 3

    footprint = _vmem_footprint(tm, tk, tn, op_bytes, w_buf)
    vmem_limit = min(max(int(footprint * 1.8), footprint + (4 << 20), 32 << 20),
                     vmem_cap - (16 << 20))

    # --- operands: stacked activations, transposed weight, f32 bias row ---
    x = jnp.stack([location_param, scale_param], axis=0).astype(operand_dtype)
    x = jnp.pad(x, ((0, 0), (0, m_pad - batch), (0, k_pad - latent_dim)))
    w_t = jnp.pad(weight.T.astype(operand_dtype),
                  ((0, k_pad - latent_dim), (0, n_pad - n_classes)))
    bias2d = jnp.pad(bias.astype(jnp.float32).reshape(1, n_classes),
                     ((0, 0), (0, n_pad - n_classes)))

    grid = (m_grid, n_grid, k_grid)

    x_spec = pl.BlockSpec((2, tm, tk), lambda i, j, k: (0, i, k))
    w_map = lambda i, j, k: (k, j)
    if w_buf > 2:
        try:
            w_spec = pl.BlockSpec((tk, tn), w_map, pipeline_mode=pl.Buffered(w_buf))
        except TypeError:   # older jax without pipeline_mode kwarg
            w_spec = pl.BlockSpec((tk, tn), w_map)
    else:
        w_spec = pl.BlockSpec((tk, tn), w_map)
    b_spec = pl.BlockSpec((1, tn), lambda i, j, k: (0, j))
    out_spec = pl.BlockSpec((tm, tn), lambda i, j, k: (i, j))

    out_shape = (
        jax.ShapeDtypeStruct((m_pad, n_pad), jnp.float32),
        jax.ShapeDtypeStruct((m_pad, n_pad), jnp.float32),
    )

    cost = pl.CostEstimate(
        flops=4 * m_pad * k_pad * n_pad,                       # two MXU matmuls (padded)
        transcendentals=0,
        bytes_accessed=(2 * m_pad * k_pad * op_bytes * n_grid  # x re-read per N tile
                        + k_pad * n_pad * op_bytes * m_grid    # W^T re-read per M tile
                        + n_pad * 4
                        + 2 * m_pad * n_pad * 4),
    )

    loc_p, scale_p = pl.pallas_call(
        _linear_transform_kernel,
        out_shape=out_shape,
        grid=grid,
        in_specs=[x_spec, w_spec, b_spec],
        out_specs=[out_spec, out_spec],
        compiler_params=pltpu.CompilerParams(
            dimension_semantics=("parallel", "parallel", "arbitrary"),
            vmem_limit_bytes=vmem_limit),
        cost_estimate=cost,
    )(x, w_t, bias2d)

    # Slice the lane-padded f32 outputs back to the true shape / dtype.
    loc = loc_p[:batch, :n_classes].astype(out_dtype)
    scale = scale_p[:batch, :n_classes].astype(out_dtype)
    return loc, scale


def init_params(key, latent_dim, n_classes):
    """Deterministic init mirroring the PyTorch module's reset_parameters()."""
    k_w, k_b = jax.random.split(key)
    # kaiming_uniform_(a=sqrt(5)) on [n_classes, latent_dim]: bound = 1/sqrt(fan_in)
    w_bound = 1.0 / math.sqrt(latent_dim)
    weight = jax.random.uniform(k_w, (n_classes, latent_dim),
                                minval=-w_bound, maxval=w_bound, dtype=jnp.float32)
    b_bound = 1.0 / math.sqrt(latent_dim)
    bias = jax.random.uniform(k_b, (n_classes,),
                              minval=-b_bound, maxval=b_bound, dtype=jnp.float32)
    return weight, bias


if __name__ == "__main__":
    batch = 8
    latent_dim = 32
    n_classes = 16

    key = jax.random.PRNGKey(0)
    k_params, k_loc, k_scale = jax.random.split(key, 3)

    weight, bias = init_params(k_params, latent_dim, n_classes)
    location_param = jax.random.normal(k_loc, (batch, latent_dim), dtype=jnp.float32)
    # scale params of a Cauchy are positive
    scale_param = jnp.abs(jax.random.normal(k_scale, (batch, latent_dim),
                                            dtype=jnp.float32)) + 0.1

    # f32 operands at demo size (keeps the 1e-5 tolerance tight); auto-bf16
    # only kicks in for large shapes on v6e/v7x.
    loc, scale = linear_transformation_layer(location_param, scale_param,
                                             weight, bias, use_bf16=False)
    jax.block_until_ready((loc, scale))

    # reference check (plain JAX)
    loc_ref = location_param @ weight.T + bias
    scale_ref = scale_param @ jnp.abs(weight).T
    assert loc.shape == (batch, n_classes) and scale.shape == (batch, n_classes)
    assert jnp.allclose(loc, loc_ref, atol=1e-5, rtol=1e-5)
    assert jnp.allclose(scale, scale_ref, atol=1e-5, rtol=1e-5)

    print("KERNEL_OK")
</pallas_src>

<mosaic_0001>
module attributes {stable_mosaic.version = 11 : i64} {
  func.func @_linear_transform_kernel(%arg0: i32, %arg1: i32, %arg2: i32, %arg3: memref<2x8x128xf32, #tpu.memory_space<vmem>>, %arg4: memref<128x128xf32, #tpu.memory_space<vmem>>, %arg5: memref<1x128xf32, #tpu.memory_space<vmem>>, %arg6: memref<8x128xf32, #tpu.memory_space<vmem>>, %arg7: memref<8x128xf32, #tpu.memory_space<vmem>>) attributes {dimension_semantics = [#tpu.dimension_semantics<parallel>, #tpu.dimension_semantics<parallel>, #tpu.dimension_semantics<arbitrary>], iteration_bounds = array<i64: 1, 1, 1>, scalar_prefetch = 0 : i64, scratch_operands = 0 : i64, tpu.core_type = #tpu.core_type<tc>, window_params = [{transform_indices = @transform_0, window_bounds = array<i64: 2, 8, 128>}, {transform_indices = @transform_1, window_bounds = array<i64: 128, 128>}, {transform_indices = @transform_2, window_bounds = array<i64: 1, 128>}, {transform_indices = @transform_3, window_bounds = array<i64: 8, 128>}, {transform_indices = @transform_4, window_bounds = array<i64: 8, 128>}]} {
    %c0_i32 = arith.constant 0 : i32
    %0 = arith.cmpi eq, %arg2, %c0_i32 : i32
    %1 = arith.extui %0 : i1 to i32
    %c0_i32_0 = arith.constant 0 : i32
    %2 = arith.cmpi ne, %1, %c0_i32_0 : i32
    scf.if %2 {
      %c0_16 = arith.constant 0 : index
      %c0_17 = arith.constant 0 : index
      %20 = vector.load %arg5[%c0_16, %c0_17] : memref<1x128xf32, #tpu.memory_space<vmem>>, vector<1x128xf32>
      %21 = vector.shape_cast %20 : vector<1x128xf32> to vector<1x128xf32>
      %22 = vector.broadcast %21 : vector<1x128xf32> to vector<8x128xf32>
      %c0_18 = arith.constant 0 : index
      %c0_19 = arith.constant 0 : index
      %23 = vector.load %arg6[%c0_18, %c0_19] : memref<8x128xf32, #tpu.memory_space<vmem>>, vector<8x128xf32>
      tpu.vector_store %arg6[%c0_18, %c0_19], %22 {strides = array<i32>} : memref<8x128xf32, #tpu.memory_space<vmem>>, vector<8x128xf32>,
      %cst_20 = arith.constant 0.000000e+00 : f32
      %24 = vector.broadcast %cst_20 : f32 to vector<8x128xf32>
      %c0_21 = arith.constant 0 : index
      %c0_22 = arith.constant 0 : index
      %25 = vector.load %arg7[%c0_21, %c0_22] : memref<8x128xf32, #tpu.memory_space<vmem>>, vector<8x128xf32>
      tpu.vector_store %arg7[%c0_21, %c0_22], %24 {strides = array<i32>} : memref<8x128xf32, #tpu.memory_space<vmem>>, vector<8x128xf32>,
    } else {
    }
    %c0 = arith.constant 0 : index
    %c0_1 = arith.constant 0 : index
    %3 = vector.load %arg4[%c0, %c0_1] : memref<128x128xf32, #tpu.memory_space<vmem>>, vector<128x128xf32>
    %4 = tpu.bitcast %3 : vector<128x128xf32> -> vector<128x128xi32>
    %c2147483647_i32 = arith.constant 2147483647 : i32
    %5 = vector.broadcast %c2147483647_i32 : i32 to vector<128x128xi32>
    %6 = arith.andi %4, %5 : vector<128x128xi32>
    %7 = tpu.bitcast %6 : vector<128x128xi32> -> vector<128x128xf32>
    %c0_2 = arith.constant 0 : index
    %c0_3 = arith.constant 0 : index
    %8 = vector.load %arg6[%c0_2, %c0_3] : memref<8x128xf32, #tpu.memory_space<vmem>>, vector<8x128xf32>
    %c0_4 = arith.constant 0 : index
    %c0_5 = arith.constant 0 : index
    %c0_6 = arith.constant 0 : index
    %9 = vector.load %arg3[%c0_4, %c0_5, %c0_6] : memref<2x8x128xf32, #tpu.memory_space<vmem>>, vector<1x8x128xf32>
    %10 = vector.shape_cast %9 : vector<1x8x128xf32> to vector<8x128xf32>
    %cst = arith.constant dense<0.000000e+00> : vector<8x128xf32>
    %11 = tpu.matmul %10, %3, %cst {dimension_numbers = #tpu.dot_dimension_numbers<[1], [0], [0], [1], [0, 0, 1, 1], [], []>} : vector<8x128xf32>, vector<128x128xf32>, vector<8x128xf32> -> vector<8x128xf32>
    %12 = arith.addf %8, %11 : vector<8x128xf32>
    %c0_7 = arith.constant 0 : index
    %c0_8 = arith.constant 0 : index
    %13 = vector.load %arg6[%c0_7, %c0_8] : memref<8x128xf32, #tpu.memory_space<vmem>>, vector<8x128xf32>
    tpu.vector_store %arg6[%c0_7, %c0_8], %12 {strides = array<i32>} : memref<8x128xf32, #tpu.memory_space<vmem>>, vector<8x128xf32>,
    %c0_9 = arith.constant 0 : index
    %c0_10 = arith.constant 0 : index
    %14 = vector.load %arg7[%c0_9, %c0_10] : memref<8x128xf32, #tpu.memory_space<vmem>>, vector<8x128xf32>
    %c1 = arith.constant 1 : index
    %c0_11 = arith.constant 0 : index
    %c0_12 = arith.constant 0 : index
    %15 = vector.load %arg3[%c1, %c0_11, %c0_12] : memref<2x8x128xf32, #tpu.memory_space<vmem>>, vector<1x8x128xf32>
    %16 = vector.shape_cast %15 : vector<1x8x128xf32> to vector<8x128xf32>
    %cst_13 = arith.constant dense<0.000000e+00> : vector<8x128xf32>
    %17 = tpu.matmul %16, %7, %cst_13 {dimension_numbers = #tpu.dot_dimension_numbers<[1], [0], [0], [1], [0, 0, 1, 1], [], []>} : vector<8x128xf32>, vector<128x128xf32>, vector<8x128xf32> -> vector<8x128xf32>
    %18 = arith.addf %14, %17 : vector<8x128xf32>
    %c0_14 = arith.constant 0 : index
    %c0_15 = arith.constant 0 : index
    %19 = vector.load %arg7[%c0_14, %c0_15] : memref<8x128xf32, #tpu.memory_space<vmem>>, vector<8x128xf32>
    tpu.vector_store %arg7[%c0_14, %c0_15], %18 {strides = array<i32>} : memref<8x128xf32, #tpu.memory_space<vmem>>, vector<8x128xf32>,
    return
  }
  func.func @transform_0(%arg0: i32, %arg1: i32, %arg2: i32) -> (i32, i32, i32) {
    %c0_i32 = arith.constant 0 : i32
    %c0_i32_0 = arith.constant 0 : i32
    return %c0_i32, %arg0, %arg2 : i32, i32, i32
  }
  func.func @transform_1(%arg0: i32, %arg1: i32, %arg2: i32) -> (i32, i32) {
    %c0_i32 = arith.constant 0 : i32
    return %arg2, %arg1 : i32, i32
  }
  func.func @transform_2(%arg0: i32, %arg1: i32, %arg2: i32) -> (i32, i32) {
    %c0_i32 = arith.constant 0 : i32
    %c0_i32_0 = arith.constant 0 : i32
    return %c0_i32, %arg1 : i32, i32
  }
  func.func @transform_3(%arg0: i32, %arg1: i32, %arg2: i32) -> (i32, i32) {
    %c0_i32 = arith.constant 0 : i32
    return %arg0, %arg1 : i32, i32
  }
  func.func @transform_4(%arg0: i32, %arg1: i32, %arg2: i32) -> (i32, i32) {
    %c0_i32 = arith.constant 0 : i32
    return %arg0, %arg1 : i32, i32
  }
}

</mosaic_0001>

<bundles_post_ra>
// kernel: tpu_custom_call.1
= control target key start
LH: loop header
LB: loop body
LE: loop exit
PB: predicated region body
PF: predicated region fallthrough
CT: control target
= control target key end

     0   :  { %10 = vsyncpa [#allocation3], 0  ;;  %s365_s0 = inlined_call_operand.hbm [shape: f32[2,8,128], index: 0, kind: input, shape index: {}]   ;;  %s366_s1 = inlined_call_operand.hbm [shape: f32[128,128], index: 1, kind: input, shape index: {}]   ;;  %s367_s2 = inlined_call_operand.vmem [shape: f32[1,128], index: 2, kind: input, shape index: {}]   ;;  %s368_s3 = inlined_call_operand.hbm [shape: f32[8,128], index: 3, kind: output, shape index: {0}]   ;;  %s369_s4 = inlined_call_operand.hbm [shape: f32[8,128], index: 4, kind: output, shape index: {1}]  }
   0x1   :  { %11 = vsyncpa [#allocation6], 0 }
   0x2   :  { %12 = vsyncpa [#allocation4], 0 }
   0x3   :  { %13 = vsyncpa [#allocation9], 0  ;;  %s18_s17 = sshll.u32 %s365_s0, 4  ;;  %s319_s18 = smov [#allocation2]   ;;  %s19_s17 = int_to_ptr.hbm [resolvable:$true] %s18_s17 }
   0x4   :  { %s20_s19 = sshll.u32 %s319_s18, 4  ;;  %s31_s22 = sshll.u32 %s366_s1, 4  ;;  %s21_s19 = int_to_ptr.vmem [resolvable:$true] %s20_s19  ;;  %s32_s22 = int_to_ptr.hbm [resolvable:$true] %s31_s22 }
   0x5   :  { %s320_s23 = smov 128   ;;  %s321_s24 = smov 8  }
   0x6   :  { %26 = dma.hbm_to_vmem [thread:$0]  %s19_s17, 256, %s21_s19, [#allocation3], %s320_s23, %s320_s23, %s321_s24  }
   0x7   :  { %s322_s25 = smov [#allocation5]  }
   0x8   :  { %s33_s26 = sshll.u32 %s322_s25, 4  ;;  %s34_s26 = int_to_ptr.vmem [resolvable:$true] %s33_s26 }
   0x9   :  { %39 = dma.hbm_to_vmem [thread:$0]  %s32_s22, 2048, %s34_s26, [#allocation6], %s320_s23, %s320_s23, %s321_s24  }
   0xa   :  { %311 = dma.done.wait [#allocation3], 256  }
   0xb   :  { %312 = vsyncadd [#allocation3], 4294967040 }
   0xc   :  { %313 = dma.done.wait [#allocation6], 2048  }
   0xd   :  { %314 = vsyncadd [#allocation6], 4294965248  ;;  %v75_v0 = vld [vmem:[#allocation5 + $0x78] sm:$0xff]  ;;  %v74_v1 = vld [vmem:[#allocation5 + $0x70] sm:$0xff]  ;;  %s323_s27 = smov [#allocation7]   ;;  %s180_s5 = sshll.u32 %s368_s3, 4  ;;  %s181_s5 = int_to_ptr.hbm [resolvable:$true] %s180_s5 }
   0xe   :  { %v73_v2 = vld [vmem:[#allocation5 + $0x68] sm:$0xff]  ;;  %126 = vmatpush.msra.mxu0 %v75_v0  ;;  %v107_v3 = vand.u32 2147483647, %v75_v0  ;;  %v106_v4 = vand.u32 2147483647, %v74_v1  ;;  %v72_v5 = vld [vmem:[#allocation5 + $0x60] sm:$0xff] }
   0xf   :  { %v105_v6 = vand.u32 2147483647, %v73_v2  ;;  %v71_v7 = vld [vmem:[#allocation5 + $0x58] sm:$0xff]  ;;  %v104_v8 = vand.u32 2147483647, %v72_v5  ;;  %v70_v9 = vld [vmem:[#allocation5 + $0x50] sm:$0xff] }
  0x10   :  { %151 = vmatpush.msra.mxu1 %v107_v3  ;;  %127 = vmatpush.msra.mxu0 %v74_v1  ;;  %v103_v10 = vand.u32 2147483647, %v71_v7  ;;  %v69_v11 = vld [vmem:[#allocation5 + $0x48] sm:$0xff]  ;;  %v102_v12 = vand.u32 2147483647, %v70_v9  ;;  %v68_v13 = vld [vmem:[#allocation5 + $0x40] sm:$0xff] }
  0x11   :  { %v101_v14 = vand.u32 2147483647, %v69_v11  ;;  %v67_v15 = vld [vmem:[#allocation5 + $0x38] sm:$0xff]  ;;  %v100_v16 = vand.u32 2147483647, %v68_v13  ;;  %v66_v17 = vld [vmem:[#allocation5 + $0x30] sm:$0xff] }
  0x12   :  { %152 = vmatpush.msra.mxu1 %v106_v4  ;;  %128 = vmatpush.msra.mxu0 %v73_v2  ;;  %v99_v18 = vand.u32 2147483647, %v67_v15  ;;  %v65_v19 = vld [vmem:[#allocation5 + $0x28] sm:$0xff]  ;;  %v98_v20 = vand.u32 2147483647, %v66_v17  ;;  %v64_v21 = vld [vmem:[#allocation5 + $0x20] sm:$0xff] }
  0x13   :  { %v97_v22 = vand.u32 2147483647, %v65_v19  ;;  %v63_v23 = vld [vmem:[#allocation5 + $0x18] sm:$0xff]  ;;  %v96_v24 = vand.u32 2147483647, %v64_v21  ;;  %v62_v25 = vld [vmem:[#allocation5 + $0x10] sm:$0xff] }
  0x14   :  { %153 = vmatpush.msra.mxu1 %v105_v6  ;;  %129 = vmatpush.msra.mxu0 %v72_v5  ;;  %v95_v26 = vand.u32 2147483647, %v63_v23  ;;  %v61_v27 = vld [vmem:[#allocation5 + $0x8] sm:$0xff]  ;;  %v94_v28 = vand.u32 2147483647, %v62_v25  ;;  %v60_v29 = vld [vmem:[#allocation5] sm:$0xff] }
  0x15   :  { %v93_v30 = vand.u32 2147483647, %v61_v27  ;;  %v92_v31 = vand.u32 2147483647, %v60_v29  ;;  %v125_v32 = vld [vmem:[#allocation2] sm:$0xff]  ;;  %v150_v33 = vld [vmem:[#allocation2 + $0x8] sm:$0xff] }
  0x16   :  { %154 = vmatpush.msra.mxu1 %v104_v8  ;;  %130 = vmatpush.msra.mxu0 %v71_v7  ;;  %v214_v34 = vld [vmem:[%s367_s2] ss:$0 sm:$0xff]  ;;  %s178_s28 = sshll.u32 %s323_s27, 4  ;;  %s324_s6 = smov [#allocation8]   ;;  %s179_s28 = int_to_ptr.vmem [resolvable:$true] %s178_s28 }
  0x17   :  { %s189_s7 = sshll.u32 %s324_s6, 4  ;;  %s191_s10 = sshll.u32 %s369_s4, 4  ;;  %s190_s7 = int_to_ptr.vmem [resolvable:$true] %s189_s7  ;;  %s192_s10 = int_to_ptr.hbm [resolvable:$true] %s191_s10 }
  0x18   :  { %155 = vmatpush.msra.mxu1 %v103_v10  ;;  %131 = vmatpush.msra.mxu0 %v70_v9 }
  0x1a   :  { %156 = vmatpush.msra.mxu1 %v102_v12  ;;  %132 = vmatpush.msra.mxu0 %v69_v11 }
  0x1c   :  { %157 = vmatpush.msra.mxu1 %v101_v14  ;;  %133 = vmatpush.msra.mxu0 %v68_v13 }
  0x1e   :  { %158 = vmatpush.msra.mxu1 %v100_v16  ;;  %134 = vmatpush.msra.mxu0 %v67_v15 }
  0x20   :  { %159 = vmatpush.msra.mxu1 %v99_v18  ;;  %135 = vmatpush.msra.mxu0 %v66_v17 }
  0x22   :  { %160 = vmatpush.msra.mxu1 %v98_v20  ;;  %136 = vmatpush.msra.mxu0 %v65_v19 }
  0x24   :  { %161 = vmatpush.msra.mxu1 %v97_v22  ;;  %137 = vmatpush.msra.mxu0 %v64_v21 }
  0x26   :  { %162 = vmatpush.msra.mxu1 %v96_v24  ;;  %138 = vmatpush.msra.mxu0 %v63_v23 }
  0x28   :  { %163 = vmatpush.msra.mxu1 %v95_v26  ;;  %139 = vmatpush.msra.mxu0 %v62_v25 }
  0x2a   :  { %164 = vmatpush.msra.mxu1 %v94_v28  ;;  %140 = vmatpush.msra.mxu0 %v61_v27 }
  0x2c   :  { %165 = vmatpush.msra.mxu1 %v93_v30  ;;  %141 = vmatpush.msra.mxu0 %v60_v29 }
  0x2d   :  { %142 = vmatmul.f32.vlgmr.msra.gmra.mxu0 %v125_v32 }
  0x2e   :  { %166 = vmatpush.msra.mxu1 %v92_v31 }
  0x2f   :  { %167 = vmatmul.f32.vlgmr.msra.gmra.mxu1 %v150_v33 }
  0xaa   :  { %v143_v35 = vpop.f32.mrf.mxu0 }
  0xab   :  { %v146_v36 = vadd.f32 %v214_v34, %v143_v35 }
  0xac   :  { %v168_v37 = vpop.f32.mrf.mxu1 }
  0xad   :  { %147 = vst [vmem:[#allocation7] sm:$0xff] %v146_v36 }
  0xae   :  { %183 = dma.vmem_to_hbm [thread:$0]  %s179_s28, 128, %s181_s5, [#allocation4]   ;;  %172 = vst [vmem:[#allocation8] sm:$0xff] %v168_v37 }
  0xaf   :  { %194 = dma.vmem_to_hbm [thread:$0]  %s190_s7, 128, %s192_s10, [#allocation9]  }
  0xb0   :  { %315 = dma.done.wait [#allocation4], 128  }
  0xb1   :  { %316 = vsyncadd [#allocation4], 4294967168 }
  0xb2   :  { %317 = dma.done.wait [#allocation9], 128  }
  0xb3   :  { %318 = vsyncadd [#allocation9], 4294967168 }
  0xb4   :  { %203 = vsyncpa [#allocation3], 1 }
  0xb5   :  { %204 = vsyncpa [#allocation6], 1 }
  0xb6   :  { %205 = vsyncpa [#allocation4], 1 }
  0xb7   :  { %206 = vsyncpa [#allocation9], 1 }

</bundles_post_ra>
